<compile_context>
chip_gen: v7x
topology: tpu7x:2x2x1
jax: 0.10.0
libtpu: 0.0.40
codegen_flags: <defaults>
</compile_context>

<pallas_src>
from functools import partial

import jax
import jax.numpy as jnp
from jax.experimental import pallas as pl
from jax.experimental.pallas import tpu as pltpu


_MAX_SINGLE_SLAB_BYTES = 10 * 1024 * 1024   # conservative across v5e/v6e/v7x
_VMEM_SLAB_BUDGET = 40 * 1024 * 1024        # 2x(in)+2x(out) slab budget
_SPATIAL_TILE_BYTES = 4 * 1024 * 1024       # per-tile x bytes in the split path


def _round_up(x, m):
    return ((x + m - 1) // m) * m


# ----------------------------------------------------------------------------
# Fused single-pass path: one (Bt, C, S) slab per grid step.
# ----------------------------------------------------------------------------
def _se_fused_kernel(x_ref, w1_ref, w2_ref, o_ref, *, inv_s):
    x = x_ref[...]                                              # (Bt, C, S) native dtype
    # Global average pool over spatial: f32 accumulation, no full-slab upcast.
    pooled = jnp.sum(x, axis=-1, keepdims=True,
                     dtype=jnp.float32) * inv_s                 # (Bt, C, 1) f32
    # FC1 (no bias): h[b, j] = sum_c pooled[b, c] * w1[c, j]   (VALU/XLU, not MXU)
    w1 = w1_ref[...].astype(jnp.float32)                        # (C, Ch)
    h = jnp.sum(pooled * w1[None, :, :], axis=1, keepdims=True)  # (Bt, 1, Ch)
    h = h * jax.nn.sigmoid(h)                                   # SiLU (EUP)
    # FC2 (no bias): g[b, c] = sum_j h[b, j] * w2[c, j]
    w2 = w2_ref[...].astype(jnp.float32)                        # (C, Ch)
    g = jnp.sum(h * w2[None, :, :], axis=-1, keepdims=True)     # (Bt, C, 1)
    g = jax.nn.sigmoid(g)
    # Channel-wise scale in the native dtype (bf16 stays packed).
    o_ref[...] = x * g.astype(o_ref.dtype)


def _choose_bt(B, slab_bytes, C, Ch):
    """Batch-block size: amortize per-step overhead, respect VMEM, keep >=2 steps."""
    max_bt = max(1, _VMEM_SLAB_BUDGET // max(1, 4 * slab_bytes))
    max_bt = min(max_bt, 8, B)
    # Keep the (Bt, C, Ch) f32 gate intermediates modest.
    while max_bt > 1 and max_bt * C * Ch * 4 > (4 << 20):
        max_bt -= 1
    bt = 1
    for d in range(1, max_bt + 1):
        if B % d == 0:
            bt = d
    # v7x megacore: keep at least 2 grid steps on the parallel axis when B > 1.
    if bt > 1 and (B // bt) < 2:
        bt = max(1, bt // 2)
        while B % bt != 0:
            bt -= 1
    return bt


def _se_fused(x3, w1, w2, slab_bytes):
    B, C, S = x3.shape
    Ch = w1.shape[1]
    itemsize = x3.dtype.itemsize
    bt = _choose_bt(B, slab_bytes, C, Ch)

    w_bytes = w1.size * w1.dtype.itemsize + w2.size * w2.dtype.itemsize
    vmem_limit = int(4 * bt * slab_bytes + 2 * w_bytes
                     + 4 * bt * C * Ch * 4 + (8 << 20))

    const_map = lambda i: (0, 0)
    return pl.pallas_call(
        partial(_se_fused_kernel, inv_s=1.0 / S),
        out_shape=jax.ShapeDtypeStruct((B, C, S), x3.dtype),
        grid_spec=pltpu.PrefetchScalarGridSpec(
            num_scalar_prefetch=0,
            grid=(B // bt,),
            in_specs=[
                pl.BlockSpec((bt, C, S), lambda i: (i, 0, 0)),
                pl.BlockSpec((C, Ch), const_map),     # W1 resident
                pl.BlockSpec((C, Ch), const_map),     # W2 resident
            ],
            out_specs=pl.BlockSpec((bt, C, S), lambda i: (i, 0, 0)),
        ),
        input_output_aliases={0: 0},                  # out reuses x's buffer
        compiler_params=pltpu.CompilerParams(
            dimension_semantics=("parallel",),
            vmem_limit_bytes=vmem_limit),
    )(x3, w1, w2)


# ----------------------------------------------------------------------------
# Two-pass split path for slabs too large for VMEM (v7x: 64 MiB/TC).
# ----------------------------------------------------------------------------
def _se_pool_gate_kernel(x_ref, w1_ref, w2_ref, gate_ref, *,
                         inv_s, s_total, ts, need_mask):
    s_idx = pl.program_id(1)

    @pl.when(s_idx == 0)
    def _():
        gate_ref[...] = jnp.zeros_like(gate_ref)

    x = x_ref[...]                                              # (1, C, ts)
    if need_mask:  # static: mask the ragged spatial tail
        lane = jax.lax.broadcasted_iota(jnp.int32, x.shape, 2)
        valid = (s_idx * ts + lane) < s_total
        x = jnp.where(valid, x, jnp.zeros_like(x))
    gate_ref[...] += jnp.sum(x, axis=-1, keepdims=True, dtype=jnp.float32)

    @pl.when(s_idx == pl.num_programs(1) - 1)
    def _():
        pooled = gate_ref[...] * inv_s                          # (1, C, 1) f32
        w1 = w1_ref[...].astype(jnp.float32)
        h = jnp.sum(pooled * w1[None, :, :], axis=1, keepdims=True)   # (1, 1, Ch)
        h = h * jax.nn.sigmoid(h)
        w2 = w2_ref[...].astype(jnp.float32)
        g = jnp.sum(h * w2[None, :, :], axis=-1, keepdims=True)       # (1, C, 1)
        gate_ref[...] = jax.nn.sigmoid(g)


def _se_scale_kernel(x_ref, gate_ref, o_ref):
    o_ref[...] = x_ref[...] * gate_ref[...].astype(o_ref.dtype)


def _se_split(x3, w1, w2, tile_override=None):
    B, C, S = x3.shape
    Ch = w1.shape[1]
    itemsize = x3.dtype.itemsize

    if tile_override is not None:
        ts = int(tile_override)
    else:
        target = max(128, _SPATIAL_TILE_BYTES // max(1, C * itemsize))
        ts = max(128, (target // 128) * 128)
    ts = min(ts, _round_up(S, 128))           # lane-aligned spatial tile
    ns = pl.cdiv(S, ts)
    need_mask = (S % ts) != 0

    w_bytes = w1.size * w1.dtype.itemsize + w2.size * w2.dtype.itemsize
    vmem1 = int(2 * C * ts * itemsize + 2 * w_bytes + 2 * C * 4 + (8 << 20))
    vmem2 = int(4 * C * ts * itemsize + 2 * C * 4 + (8 << 20))

    const_map = lambda b, s: (0, 0)

    # Pass 1: pooled-sum accumulation (f32, resident block) + gate MLP on last tile.
    gate = pl.pallas_call(
        partial(_se_pool_gate_kernel, inv_s=1.0 / S, s_total=S, ts=ts,
                need_mask=need_mask),
        out_shape=jax.ShapeDtypeStruct((B, C, 1), jnp.float32),
        grid_spec=pltpu.PrefetchScalarGridSpec(
            num_scalar_prefetch=0,
            grid=(B, ns),
            in_specs=[
                pl.BlockSpec((1, C, ts), lambda b, s: (b, 0, s)),
                pl.BlockSpec((C, Ch), const_map),
                pl.BlockSpec((C, Ch), const_map),
            ],
            out_specs=pl.BlockSpec((1, C, 1), lambda b, s: (b, 0, 0)),
        ),
        compiler_params=pltpu.CompilerParams(
            dimension_semantics=("parallel", "arbitrary"),
            vmem_limit_bytes=vmem1),
    )(x3, w1, w2)

    # Pass 2: re-stream x and apply the channel gate (native dtype multiply).
    return pl.pallas_call(
        _se_scale_kernel,
        out_shape=jax.ShapeDtypeStruct((B, C, S), x3.dtype),
        grid_spec=pltpu.PrefetchScalarGridSpec(
            num_scalar_prefetch=0,
            grid=(B, ns),
            in_specs=[
                pl.BlockSpec((1, C, ts), lambda b, s: (b, 0, s)),
                pl.BlockSpec((1, C, 1), lambda b, s: (b, 0, 0)),
            ],
            out_specs=pl.BlockSpec((1, C, ts), lambda b, s: (b, 0, s)),
        ),
        input_output_aliases={0: 0},
        compiler_params=pltpu.CompilerParams(
            dimension_semantics=("parallel", "parallel"),
            vmem_limit_bytes=vmem2),
    )(x3, gate)


# ----------------------------------------------------------------------------
# Public wrapper.
# ----------------------------------------------------------------------------
def squeeze_excitation(x, w1, w2, *,
                       max_single_slab_bytes=_MAX_SINGLE_SLAB_BYTES,
                       _spatial_tile_override=None):
    """x: (B, C, H, W); w1: (C, Ch) = gate_fc1.weight.T; w2: (C, Ch) = gate_fc2.weight."""
    B, C, H, W = x.shape
    Ch = w1.shape[1]
    assert w1.shape == (C, Ch), f"w1 must be (C, Ch)={C, Ch}, got {w1.shape}"
    assert w2.shape == (C, Ch), f"w2 must be (C, Ch)={C, Ch}, got {w2.shape}"
    S = H * W
    x3 = x.reshape(B, C, S)                       # free reshape: spatial on lanes

    slab_bytes = C * S * x.dtype.itemsize
    if slab_bytes <= max_single_slab_bytes:
        out3 = _se_fused(x3, w1, w2, slab_bytes)
    else:
        out3 = _se_split(x3, w1, w2, tile_override=_spatial_tile_override)
    return out3.reshape(B, C, H, W)


def _reference(x, w1, w2):
    pooled = jnp.mean(x.astype(jnp.float32), axis=(2, 3))       # (B, C)
    h = pooled @ w1.astype(jnp.float32)                          # (B, Ch)
    h = h * jax.nn.sigmoid(h)                                    # SiLU
    g = jax.nn.sigmoid(h @ w2.astype(jnp.float32).T)             # (B, C)
    return (x * g[:, :, None, None].astype(x.dtype)).astype(x.dtype)


if __name__ == "__main__":
    key = jax.random.PRNGKey(0)
    kx, k1, k2, kx2, kx3 = jax.random.split(key, 5)

    C = 32
    Ch = int(C * 0.25)                                           # 8
    w1 = jax.random.normal(k1, (C, Ch), dtype=jnp.float32) * 0.1  # gate[1].weight.T
    w2 = jax.random.normal(k2, (C, Ch), dtype=jnp.float32) * 0.1  # gate[3].weight

    # 1) f32, fused single-slab path.
    x = jax.random.normal(kx, (2, C, 16, 16), dtype=jnp.float32)
    out = jax.block_until_ready(squeeze_excitation(x, w1, w2))
    ref = _reference(x, w1, w2)
    assert out.shape == x.shape
    assert jnp.allclose(out, ref, atol=1e-5, rtol=1e-5), "f32 fused path mismatch"

    # 2) bf16, fused path with multi-batch blocking (Bt=2); native-dtype scale.
    xb = jax.random.normal(kx2, (4, C, 16, 16), dtype=jnp.bfloat16)
    w1b, w2b = w1.astype(jnp.bfloat16), w2.astype(jnp.bfloat16)
    outb = jax.block_until_ready(squeeze_excitation(xb, w1b, w2b))
    refb = _reference(xb, w1b, w2b)
    assert jnp.allclose(outb.astype(jnp.float32), refb.astype(jnp.float32),
                        atol=5e-2, rtol=5e-2), "bf16 fused path mismatch"

    # 3) Forced two-pass spatial-split path (large-slab fallback), ragged tail masked.
    xs = jax.random.normal(kx3, (2, C, 12, 12), dtype=jnp.float32)
    outs = jax.block_until_ready(
        squeeze_excitation(xs, w1, w2, max_single_slab_bytes=0,
                           _spatial_tile_override=128))
    refs = _reference(xs, w1, w2)
    assert jnp.allclose(outs, refs, atol=1e-5, rtol=1e-5), "split path mismatch"

    print("KERNEL_OK")
</pallas_src>

<mosaic_0001>
module attributes {stable_mosaic.version = 11 : i64} {
  func.func @_se_fused_kernel(%arg0: i32, %arg1: memref<1x32x256xf32, #tpu.memory_space<vmem>>, %arg2: memref<32x8xf32, #tpu.memory_space<vmem>>, %arg3: memref<32x8xf32, #tpu.memory_space<vmem>>, %arg4: memref<1x32x256xf32, #tpu.memory_space<vmem>>) attributes {dimension_semantics = [#tpu.dimension_semantics<parallel>], iteration_bounds = array<i64: 2>, scalar_prefetch = 0 : i64, scratch_operands = 0 : i64, tpu.core_type = #tpu.core_type<tc>, window_params = [{transform_indices = @transform_0, window_bounds = array<i64: 1, 32, 256>}, {pipeline_mode = #tpu.pipeline_mode<synchronous>, transform_indices = @transform_1, window_bounds = array<i64: 32, 8>}, {pipeline_mode = #tpu.pipeline_mode<synchronous>, transform_indices = @transform_2, window_bounds = array<i64: 32, 8>}, {transform_indices = @transform_3, window_bounds = array<i64: 1, 32, 256>}]} {
    %c0 = arith.constant 0 : index
    %c0_0 = arith.constant 0 : index
    %c0_1 = arith.constant 0 : index
    %0 = vector.load %arg1[%c0, %c0_0, %c0_1] : memref<1x32x256xf32, #tpu.memory_space<vmem>>, vector<1x32x256xf32>
    %cst = arith.constant dense<0.000000e+00> : vector<1x32xf32>
    %1 = vector.multi_reduction <add>, %0, %cst [2] : vector<1x32x256xf32> to vector<1x32xf32>
    %2 = vector.shape_cast %1 : vector<1x32xf32> to vector<1x32x1xf32>
    %cst_2 = arith.constant 3.906250e-03 : f32
    %3 = vector.broadcast %cst_2 : f32 to vector<1x32x1xf32>
    %4 = arith.mulf %2, %3 : vector<1x32x1xf32>
    %c0_3 = arith.constant 0 : index
    %c0_4 = arith.constant 0 : index
    %5 = vector.load %arg2[%c0_3, %c0_4] : memref<32x8xf32, #tpu.memory_space<vmem>>, vector<32x8xf32>
    %6 = vector.shape_cast %5 : vector<32x8xf32> to vector<1x32x8xf32>
    %7 = vector.broadcast %4 : vector<1x32x1xf32> to vector<1x32x8xf32>
    %8 = arith.mulf %7, %6 : vector<1x32x8xf32>
    %cst_5 = arith.constant dense<0.000000e+00> : vector<1x8xf32>
    %9 = vector.multi_reduction <add>, %8, %cst_5 [1] : vector<1x32x8xf32> to vector<1x8xf32>
    %10 = vector.shape_cast %9 : vector<1x8xf32> to vector<1x1x8xf32>
    %11 = arith.negf %10 : vector<1x1x8xf32>
    %12 = math.exp %11 : vector<1x1x8xf32>
    %cst_6 = arith.constant 1.000000e+00 : f32
    %13 = vector.broadcast %cst_6 : f32 to vector<1x1x8xf32>
    %14 = arith.addf %13, %12 : vector<1x1x8xf32>
    %15 = arith.divf %13, %14 : vector<1x1x8xf32>
    %16 = arith.mulf %10, %15 : vector<1x1x8xf32>
    %c0_7 = arith.constant 0 : index
    %c0_8 = arith.constant 0 : index
    %17 = vector.load %arg3[%c0_7, %c0_8] : memref<32x8xf32, #tpu.memory_space<vmem>>, vector<32x8xf32>
    %18 = vector.shape_cast %17 : vector<32x8xf32> to vector<1x32x8xf32>
    %19 = vector.broadcast %16 : vector<1x1x8xf32> to vector<1x32x8xf32>
    %20 = arith.mulf %19, %18 : vector<1x32x8xf32>
    %cst_9 = arith.constant dense<0.000000e+00> : vector<1x32xf32>
    %21 = vector.multi_reduction <add>, %20, %cst_9 [2] : vector<1x32x8xf32> to vector<1x32xf32>
    %22 = vector.shape_cast %21 : vector<1x32xf32> to vector<1x32x1xf32>
    %23 = arith.negf %22 : vector<1x32x1xf32>
    %24 = math.exp %23 : vector<1x32x1xf32>
    %cst_10 = arith.constant 1.000000e+00 : f32
    %25 = vector.broadcast %cst_10 : f32 to vector<1x32x1xf32>
    %26 = arith.addf %25, %24 : vector<1x32x1xf32>
    %27 = arith.divf %25, %26 : vector<1x32x1xf32>
    %28 = vector.broadcast %27 : vector<1x32x1xf32> to vector<1x32x256xf32>
    %29 = arith.mulf %0, %28 : vector<1x32x256xf32>
    %c0_11 = arith.constant 0 : index
    %c0_12 = arith.constant 0 : index
    %c0_13 = arith.constant 0 : index
    %30 = vector.load %arg4[%c0_11, %c0_12, %c0_13] : memref<1x32x256xf32, #tpu.memory_space<vmem>>, vector<1x32x256xf32>
    tpu.vector_store %arg4[%c0_11, %c0_12, %c0_13], %29 {strides = array<i32>} : memref<1x32x256xf32, #tpu.memory_space<vmem>>, vector<1x32x256xf32>,
    return
  }
  func.func @transform_0(%arg0: i32) -> (i32, i32, i32) {
    %c0_i32 = arith.constant 0 : i32
    %c0_i32_0 = arith.constant 0 : i32
    %c0_i32_1 = arith.constant 0 : i32
    return %arg0, %c0_i32, %c0_i32_0 : i32, i32, i32
  }
  func.func @transform_1(%arg0: i32) -> (i32, i32) {
    %c0_i32 = arith.constant 0 : i32
    %c0_i32_0 = arith.constant 0 : i32
    %c0_i32_1 = arith.constant 0 : i32
    return %c0_i32, %c0_i32_0 : i32, i32
  }
  func.func @transform_2(%arg0: i32) -> (i32, i32) {
    %c0_i32 = arith.constant 0 : i32
    %c0_i32_0 = arith.constant 0 : i32
    %c0_i32_1 = arith.constant 0 : i32
    return %c0_i32, %c0_i32_0 : i32, i32
  }
  func.func @transform_3(%arg0: i32) -> (i32, i32, i32) {
    %c0_i32 = arith.constant 0 : i32
    %c0_i32_0 = arith.constant 0 : i32
    %c0_i32_1 = arith.constant 0 : i32
    return %arg0, %c0_i32, %c0_i32_0 : i32, i32, i32
  }
}

</mosaic_0001>

<bundles_post_ra>
// kernel: tpu_custom_call.1
= control target key start
LH: loop header
LB: loop body
LE: loop exit
PB: predicated region body
PF: predicated region fallthrough
CT: control target
= control target key end

     0   :  { %8 = vsyncpa [#allocation3], 0  ;;  %s834_s0 = inlined_call_operand.hbm [shape: f32[2,32,256], index: 0, kind: input, shape index: {}, may-alias: {0,3}]   ;;  %s835_s1 = inlined_call_operand.vmem [shape: f32[32,8], index: 1, kind: input, shape index: {}]   ;;  %s836_s2 = inlined_call_operand.vmem [shape: f32[32,8], index: 2, kind: input, shape index: {}]   ;;  %s837_s3 = inlined_call_operand.hbm [shape: f32[2,32,256], index: 3, kind: output, shape index: {}, may-alias: {0,3}]  }
   0x1   :  { %10 = vsyncpa [#allocation3 + $0x1], 0 }
   0x2   :  { %11 = vsyncpa [#allocation4], 0 }
   0x3   :  { %13 = vsyncpa [#allocation4 + $0x1], 0  ;;  %s604_s12 = smov 0   ;;  %s606_s13 = smov 0  }
   0x4   :  { %s608_s14 = smov 0   ;;  %s610_s15 = smov 0  }
   0x5 LB: > { %s625_s16 = sadd.s32 4294967295, %s576_s15   ;;  %s389_s17 = sadd.s32 4294967294, %s576_s15   ;;  %s576_s15 = sphi %s610_s15, %s850_s15   ;;  %s572_s14 = sphi %s608_s14, %s849_s14   ;;  %s568_s13 = sphi %s606_s13, %s848_s13   ;;  %s564_s12 = sphi %s604_s12, %s847_s12  }
   0x6   : > { %s629_s18 = sadd.s32 1, %s576_s15   ;;  %s26_s19 = sadd.s32 1, %s572_s14 }
   0x7   : > { %s23_s20 = ssub.s32 %s576_s15, %s629_s18  ;;  %p33_p0 = scmp.ne.s32.totalorder %s572_s14, %s568_s13 }
   0x8   : > { %p24_p1 = scmp.eq.s32.totalorder %s23_s20, 0  ;;  %p34_p2 = scmp.eq.s32.totalorder %s576_s15, 0 }
   0x9   : > { %p39_p3 = scmp.ne.s32.totalorder %s568_s13, %s564_s12  ;;  %p40_p4 = scmp.eq.s32.totalorder %s625_s16, 0 }
   0xa   : > { %s641_s21 = scalar_select %p24_p1, %s572_s14, %s26_s19  }
   0xb   : > { %p643_p5 = por %p34_p2, %p33_p0  ;;  %p647_p6 = por %p40_p4, %p39_p3 }
   0xc   : > { %p105_p7 = scmp.eq.s32.totalorder %s625_s16, 1  ;;  %p111_p8 = scmp.eq.s32.totalorder %s389_s17, 1 }
   0xd   : > { %p422_p10 = scmp.lt.s32.totalorder %s576_s15, 2  ;;  %s137_s26 = sand.u32 1, %s572_s14  }
   0xe   : > { %p654_p11 = por %p105_p7, %p33_p0  ;;  %p658_p12 = por %p111_p8, %p39_p3 }
   0xf   : > { %s408_s27 = sshll.u32 %s576_s15, 10  ;;  %s392_s28 = sshll.u32 %s137_s26, 6 }
  0x10   : > { %s841_s24 = scalar_select %p654_p11, 1, 0 }
  0x11   : > { %s842_s25 = scalar_select %p658_p12, 1, 0 }
  0x12   : > { %s667_s4 = scalar_lea.hbm %s834_s0, %s408_s27  ;;  %s141_s5 = scalar_lea.vmem [#allocation2], %s392_s28 }
  0x13   : > { %s148_s6 = sshll.u32 %s141_s5, 4  ;;  %p671_p13 = pnand %p422_p10, %p643_p5  ;;  %s675_s6 = int_to_ptr.vmem [resolvable:$true] %s148_s6 }
  0x14   : > { %s677_s8 = scalar_lea.sflag [#allocation3], %s137_s26  ;;  %s480_s9 = scalar_lea.hbm %s667_s4, 1024 }
  0x15   : > { %p481_p0 = scmp.ne.s32.totalorder %s667_s4, %s480_s9  ;;  %p482_p1 = pneg %p671_p13 }
  0x16   : > { %s485_s17 = scalar_lea.hbm %s834_s0, 2048  ;;  %p486_p4 = scmp.lt.u32.totalorder %s667_s4, %s834_s0 }
  0x17   : > { %p483_p2 = pnand %p482_p1, %p481_p0  ;;  %p487_p5 = scmp.lt.u32.totalorder %s485_s17, %s480_s9 }
  0x18   : > { %p489_p8 = scmp.lt.u32.totalorder %s480_s9, %s667_s4 }
  0x19   : > { %p484_p3 = pneg %p483_p2  ;;  %p488_p7 = por %p487_p5, %p486_p4 }
  0x1b   : > { %p490_p10 = por %p489_p8, %p488_p7 }
  0x1d   : > { %p491_p9 = pnand %p490_p10, %p484_p3 }
  0x1f   : > { %494 = shalt.err (!%p491_p9)
}
  0x20   : > { %s495_s22 = scalar_lea.vmem %s675_s6, 1024  ;;  %s578_s26 = smov [#allocation2]  }
  0x21   : > { %p496_p0 = scmp.ne.s32.totalorder %s675_s6, %s495_s22  ;;  %s500_s27 = sshll.u32 %s578_s26, 4  ;;  %s501_s27 = int_to_ptr.vmem [resolvable:$false] %s500_s27 }
  0x22   : > { %s502_s28 = scalar_lea.vmem %s501_s27, 2048  ;;  %p503_p11 = scmp.lt.s32.totalorder %s675_s6, %s501_s27 }
  0x23   : > { %p498_p2 = pnand %p496_p0, %p482_p1  ;;  %p504_p4 = scmp.lt.s32.totalorder %s502_s28, %s495_s22 }
  0x25   : > { %p499_p12 = pneg %p498_p2  ;;  %p505_p5 = por %p504_p4, %p503_p11 }
  0x27   : > { %p506_p7 = pnand %p505_p5, %p499_p12 }
  0x29   : > { %509 = shalt.err (!%p506_p7)
}
  0x2a   : > { %s579_s29 = smov 256   ;;  %s580_s30 = smov 16  }
  0x2b   : > { %417 = dma.hbm_to_vmem [thread:$0]  (!%p671_p13), %s667_s4, 1024, %s675_s6, %s677_s8, %s579_s29, %s579_s29, %s580_s30  }
  0x2c   : > { %p395_p9 = scmp.ge.s32.totalorder %s576_s15, 1  ;;  %p156_p1 = scmp.lt.s32.totalorder %s576_s15, 3 }
  0x2e   : > { %p157_p3 = pnand %p395_p9, %p156_p1 }
  0x2f   : > { %s708_s5 = sand.u32 (!%p157_p3), 1, %s568_s13  }
  0x30   : > { %160 = sbr.rel (%p157_p3) target bundleno = 449 (0x1c1), region = 32  ;;  %s396_s9 = sshll.u32 (!%p157_p3), %s708_s5, 6 }
  0x31   : > { %s163_s10 = scalar_lea.sflag (!%p157_p3), [#allocation3], %s708_s5  ;;  %s166_s11 = scalar_lea.vmem (!%p157_p3), [#allocation2], %s396_s9 }
  0x37   : > { %555 = dma.done.wait (%p647_p6), %s163_s10, 1024  }
  0x38   : > { %557 = vsyncadd (%p647_p6), %s163_s10, 4294966272  ;;  %v718_v0 = vld [vmem:[%s166_s11] sm:$0xff]  ;;  %v720_v1 = vld [vmem:[%s166_s11 + $0x8] sm:$0xff]  ;;  %vm221_vm0 = vcmask 64512   ;;  %s409_s23 = sshll.u32 %s625_s16, 10  ;;  %s188_s4 = scalar_lea.vmem [#allocation5], %s396_s9 }
  0x39   : > { %v722_v2 = vld [vmem:[%s166_s11 + $0x20] sm:$0xff]  ;;  %v197_v3 = vadd.f32 %v720_v1, %v718_v0  ;;  %v726_v4 = vld [vmem:[%s166_s11 + $0x28] sm:$0xff]  ;;  %v728_v5 = vld [vmem:[%s166_s11 + $0x10] sm:$0xff]  ;;  %s316_s6 = sshll.u32 %s188_s4, 4  ;;  %s786_s17 = scalar_lea.hbm %s837_s3, %s409_s23  ;;  %s788_s6 = int_to_ptr.vmem [resolvable:$true] %s316_s6 }
  0x3a   : > { %v730_v6 = vld [vmem:[%s166_s11 + $0x18] sm:$0xff]  ;;  %v203_v7 = vadd.f32 %v726_v4, %v722_v2  ;;  %v734_v8 = vld [vmem:[%s166_s11 + $0x30] sm:$0xff]  ;;  %v213_v15 = vld [vmem:[%s835_s1] sm:$0xff]  ;;  %s303_s16 = scalar_lea.sflag [#allocation4], %s708_s5  ;;  %s510_s9 = scalar_lea.vmem %s788_s6, 1024 }
  0x3b   : > { %v736_v9 = vld [vmem:[%s166_s11 + $0x38] sm:$0xff]  ;;  %198 = vadd.xlane.f32.xlu0 %v197_v3  ;;  %v200_v10 = vadd.f32 %v730_v6, %v728_v5  ;;  %v215_v17 = vld [vmem:[%s835_s1 + $0x10] sm:$0xff]  ;;  %v214_v18 = vld [vmem:[%s835_s1 + $0x8] sm:$0xff]  ;;  %p511_p6 = scmp.ne.s32.totalorder %s788_s6, %s510_s9  ;;  %p844_p11 = scmp.ne.s32.totalorder %s841_s24, 0 }
  0x3c   : > { %204 = vadd.xlane.f32.xlu1 %v203_v7  ;;  %v206_v11 = vadd.f32 %v736_v9, %v734_v8  ;;  %v216_v22 = vld [vmem:[%s835_s1 + $0x18] sm:$0xff]  ;;  %v243_v45 = vld [vmem:[%s836_s2 + $0x8] sm:$0xff]  ;;  %v242_v46 = vld [vmem:[%s836_s2] sm:$0xff]  ;;  %s581_s19 = smov [#allocation5]  }
  0x3d   : > { %v245_v48 = vld [vmem:[%s836_s2 + $0x18] sm:$0xff]  ;;  %v244_v49 = vld [vmem:[%s836_s2 + $0x10] sm:$0xff]  ;;  %p512_p12 = pnand %p511_p6, %p844_p11  ;;  %s514_s20 = sshll.u32 %s581_s19, 4  ;;  %s515_s20 = int_to_ptr.vmem [resolvable:$false] %s514_s20 }
  0x3e   : > { %s516_s22 = scalar_lea.vmem %s515_s20, 2048  ;;  %p517_p8 = scmp.lt.s32.totalorder %s788_s6, %s515_s20 }
  0x3f   : > { %201 = vadd.xlane.f32.xlu0 %v200_v10  ;;  %p513_p13 = pneg %p512_p12  ;;  %p518_p10 = scmp.lt.s32.totalorder %s516_s22, %s510_s9 }
  0x40   : > { %207 = vadd.xlane.f32.xlu1 %v206_v11 }
  0x41   : > { %p519_p0 = por %p518_p10, %p517_p8 }
  0x43   : > { %p520_p2 = pnand %p519_p0, %p513_p13 }
  0xc8   : > { %v199_v12 = vpop.xlane.xlu0 %198 }
  0xc9   : > { %v209_v13 = vmul.f32 0.00390625, %v199_v12  ;;  %v205_v14 = vpop.xlane.xlu1 %204 }
  0xca   : > { %v211_v16 = vmul.f32 0.00390625, %v205_v14 }
  0xcb   : > { %v217_v20 = vmul.f32 %v213_v15, %v209_v13 }
  0xcc   : > { %v202_v19 = vpop.xlane.xlu0 %201  ;;  %v219_v25 = vmul.f32 %v215_v17, %v211_v16 }
  0xcd   : > { %v210_v21 = vmul.f32 0.00390625, %v202_v19  ;;  %v208_v23 = vpop.xlane.xlu1 %207  ;;  %v222_v28 = vsel %vm221_vm0, %v217_v20, 0.0 }
  0xce   : > { %v212_v24 = vmul.f32 0.00390625, %v208_v23  ;;  %v225_v31 = vsel %vm221_vm0, %v219_v25, 0.0 }
  0xcf   : > { %v218_v26 = vmul.f32 %v214_v18, %v210_v21 }
  0xd0   : > { %v220_v27 = vmul.f32 %v216_v22, %v212_v24 }
  0xd1   : > { %v223_v29 = vsel %vm221_vm0, %v218_v26, 0.0 }
  0xd2   : > { %v224_v30 = vadd.f32 %v223_v29, %v222_v28  ;;  %v227_v32 = vsel %vm221_vm0, %v220_v27, 0.0 }
  0xd4   : > { %v226_v33 = vadd.f32 %v225_v31, %v224_v30 }
  0xd6   : > { %v228_v34 = vadd.f32 %v227_v32, %v226_v33 }
  0xd8   : > { %v229_v35 = vrot.slane %v228_v34, 4 }
  0xda   : > { %v230_v36 = vadd.f32 %v229_v35, %v228_v34 }
  0xdc   : > { %v231_v37 = vrot.slane %v230_v36, 2 }
  0xde   : > { %v232_v38 = vadd.f32 %v231_v37, %v230_v36 }
  0xe0   : > { %v233_v39 = vrot.slane %v232_v38, 1 }
  0xe2   : > { %v234_v40 = vadd.f32 %v233_v39, %v232_v38 }
  0xe4   : > { %v398_v41 = vmul.f32 -1.442695, %v234_v40 }
  0xe6   : > { %460 = vpow2.f32 %v398_v41 }
  0xf0   : > { %v461_v42 = vpop.eup %460 }
  0xf1   : > { %v238_v43 = vadd.f32 1.0, %v461_v42 }
  0xf3   : > { %462 = vrcp.f32 %v238_v43 }
  0xfd   : > { %v463_v44 = vpop.eup %462 }
  0xfe   : > { %v241_v47 = vmul.f32 %v463_v44, %v234_v40 }
 0x100   : > { %v247_v50 = vmul.f32 %v243_v45, %v241_v47  ;;  %v246_v51 = vmul.f32 %v242_v46, %v241_v47  ;;  %v249_v54 = vmul.f32 %v245_v48, %v241_v47  ;;  %v248_v55 = vmul.f32 %v244_v49, %v241_v47 }
 0x102   : > { %v253_v52 = vsel %vm221_vm0, %v247_v50, 0.0  ;;  %v250_v53 = vsel %vm221_vm0, %v246_v51, 0.0  ;;  %v259_v56 = vsel %vm221_vm0, %v249_v54, 0.0  ;;  %v256_v57 = vsel %vm221_vm0, %v248_v55, 0.0 }
 0x103   : > { %254 = vadd.xlane.f32.xlu1 %v253_v52  ;;  %251 = vadd.xlane.f32.xlu0 %v250_v53 }
 0x107   : > { %260 = vadd.xlane.f32.xlu1 %v259_v56  ;;  %257 = vadd.xlane.f32.xlu0 %v256_v57 }
 0x190   : > { %v255_v58 = vpop.xlane.xlu1 %254  ;;  %v252_v59 = vpop.xlane.xlu0 %251 }
 0x191   : > { %v400_v60 = vmul.f32 -1.442695, %v255_v58  ;;  %v399_v61 = vmul.f32 -1.442695, %v252_v59 }
 0x193   : > { %464 = vpow2.f32 %v400_v60 }
 0x194   : > { %466 = vpow2.f32 %v399_v61  ;;  %v261_v62 = vpop.xlane.xlu1 %260  ;;  %v258_v63 = vpop.xlane.xlu0 %257 }
 0x195   : > { %v402_v3 = vmul.f32 -1.442695, %v261_v62  ;;  %v401_v7 = vmul.f32 -1.442695, %v258_v63 }
 0x197   : > { %468 = vpow2.f32 %v402_v3 }
 0x198   : > { %470 = vpow2.f32 %v401_v7 }
 0x19d   : > { %v465_v10 = vpop.eup %464 }
 0x19e   : > { %v467_v11 = vpop.eup %466  ;;  %v275_v12 = vadd.f32 1.0, %v465_v10 }
 0x19f   : > { %v274_v13 = vadd.f32 1.0, %v467_v11 }
 0x1a0   : > { %472 = vrcp.f32 %v275_v12 }
 0x1a1   : > { %v469_v14 = vpop.eup %468  ;;  %474 = vrcp.f32 %v274_v13 }
 0x1a2   : > { %v471_v15 = vpop.eup %470  ;;  %v277_v16 = vadd.f32 1.0, %v469_v14 }
 0x1a3   : > { %v276_v17 = vadd.f32 1.0, %v471_v15 }
 0x1a4   : > { %476 = vrcp.f32 %v277_v16 }
 0x1a5   : > { %478 = vrcp.f32 %v276_v17 }
 0x1aa   : > { %v473_v18 = vpop.eup %472 }
 0x1ab   : > { %v475_v19 = vpop.eup %474  ;;  %v288_v20 = vmul.f32 %v473_v18, %v728_v5  ;;  %v289_v21 = vmul.f32 %v473_v18, %v730_v6 }
 0x1ac   : > { %v286_v22 = vmul.f32 %v475_v19, %v718_v0  ;;  %v287_v23 = vmul.f32 %v475_v19, %v720_v1 }
 0x1ad   : > { %296 = vst [vmem:[%s188_s4 + $0x10] sm:$0xff] %v288_v20  ;;  %297 = vst [vmem:[%s188_s4 + $0x18] sm:$0xff] %v289_v21 }
 0x1ae   : > { %v477_v24 = vpop.eup %476  ;;  %294 = vst [vmem:[%s188_s4] sm:$0xff] %v286_v22  ;;  %295 = vst [vmem:[%s188_s4 + $0x8] sm:$0xff] %v287_v23 }
 0x1af   : > { %v479_v25 = vpop.eup %478  ;;  %v292_v5 = vmul.f32 %v477_v24, %v734_v8  ;;  %v293_v6 = vmul.f32 %v477_v24, %v736_v9 }
 0x1b0   : > { %v290_v0 = vmul.f32 %v479_v25, %v722_v2  ;;  %v291_v1 = vmul.f32 %v479_v25, %v726_v4 }
 0x1b1   : > { %300 = vst [vmem:[%s188_s4 + $0x30] sm:$0xff] %v292_v5  ;;  %301 = vst [vmem:[%s188_s4 + $0x38] sm:$0xff] %v293_v6 }
 0x1b2   : > { %298 = vst [vmem:[%s188_s4 + $0x20] sm:$0xff] %v290_v0  ;;  %299 = vst [vmem:[%s188_s4 + $0x28] sm:$0xff] %v291_v1 }
 0x1b3   : > { %523 = shalt.err (!%p520_p2)
}
 0x1b4   : > { %s524_s26 = scalar_lea.hbm %s786_s17, 1024  ;;  %s528_s29 = scalar_lea.hbm %s837_s3, 2048 }
 0x1b5   : > { %p525_p4 = scmp.ne.s32.totalorder %s786_s17, %s524_s26  ;;  %p529_p9 = scmp.lt.u32.totalorder %s786_s17, %s837_s3 }
 0x1b6   : > { %p530_p1 = scmp.lt.u32.totalorder %s528_s29, %s524_s26  ;;  %p532_p6 = scmp.lt.u32.totalorder %s524_s26, %s786_s17 }
 0x1b7   : > { %p526_p5 = pnand %p525_p4, %p844_p11 }
 0x1b8   : > { %p531_p3 = por %p530_p1, %p529_p9 }
 0x1b9   : > { %p527_p7 = pneg %p526_p5 }
 0x1ba   : > { %p533_p12 = por %p532_p6, %p531_p3 }
 0x1bc   : > { %p534_p13 = pnand %p533_p12, %p527_p7 }
 0x1be   : > { %537 = shalt.err (!%p534_p13)
}
 0x1bf   : > { %s582_s11 = smov 256   ;;  %s583_s23 = smov 16  }
 0x1c0   : > { %412 = dma.vmem_to_hbm [thread:$0]  (%p844_p11), %s788_s6, 1024, %s786_s17, %s303_s16, %s582_s11, %s582_s11, %s583_s23  }
 0x1c1 PF: > { %s331_s4 = sand.u32 1, %s564_s12   ;;  %p845_p8 = scmp.ne.s32.totalorder %s842_s25, 0 }
 0x1c2   : > { %p846_p10 = scmp.ge.s32.totalorder %s576_s15, 2  ;;  %s332_s7 = scalar_lea.sflag [#allocation4], %s331_s4 }
 0x1c4   : > { %p419_p0 = pnand %p846_p10, %p845_p8 }
 0x1c6   : > { %559 = dma.done.wait (!%p419_p0), %s332_s7, 1024  }
 0x1c7   : > { %561 = vsyncadd (!%p419_p0), %s332_s7, 4294966272  ;;  %p16_p2 = scmp.ge.s32.totalorder %s629_s18, 4   ;;  %s847_s12 = smov %s568_s13 }
 0x1c8   : > { %s848_s13 = smov %s572_s14  ;;  %s849_s14 = smov %s641_s21 }
 0x1c9   : > { %s850_s15 = smov %s629_s18  ;;  %18 = sbr.rel (!%p16_p2) target bundleno = 5 (0x5), region = 77 }
 0x1d0   :  { %337 = vsyncpa [#allocation3], 1 }
 0x1d1   :  { %339 = vsyncpa [#allocation3 + $0x1], 1 }
 0x1d2   :  { %340 = vsyncpa [#allocation4], 1 }
 0x1d3   :  { %342 = vsyncpa [#allocation4 + $0x1], 1 }

</bundles_post_ra>
